<compile_context>
chip_gen: v5e
topology: v5e:2x2
jax: 0.10.0
libtpu: 0.0.40
codegen_flags: <defaults>
</compile_context>

<pallas_src>
import functools

import jax
import jax.numpy as jnp
from jax.experimental import pallas as pl
from jax.experimental.pallas import tpu as pltpu

PACK = 8  # batch rows packed per lane-dense row (8 * n_in = 128 lanes for n_in=16)


def _mlp_kernel(xp_ref, w1_ref, b1_ref, w2_ref, b2_ref, w3_ref, b3_ref,
                w4_ref, b4_ref, o_ref):
    """Fused packed 4-layer MLP for one batch tile.

    Matmuls run in bf16 on the MXU with f32 accumulation; bias-add + ReLU stay
    on the VPU in f32.  Weights and activations are fully VMEM-resident.
    """
    x = xp_ref[...].astype(jnp.bfloat16)
    h = jnp.dot(x, w1_ref[...], preferred_element_type=jnp.float32) + b1_ref[...]
    h = jnp.maximum(h, 0.0).astype(jnp.bfloat16)
    h = jnp.dot(h, w2_ref[...], preferred_element_type=jnp.float32) + b2_ref[...]
    h = jnp.maximum(h, 0.0).astype(jnp.bfloat16)
    h = jnp.dot(h, w3_ref[...], preferred_element_type=jnp.float32) + b3_ref[...]
    h = jnp.maximum(h, 0.0).astype(jnp.bfloat16)
    out = jnp.dot(h, w4_ref[...], preferred_element_type=jnp.float32) + b4_ref[...]
    o_ref[...] = out.astype(o_ref.dtype)


def _block_diag(w, p):
    """(fi, fo) -> (p*fi, p*fo) with p copies of w on the block diagonal."""
    return jnp.kron(jnp.eye(p, dtype=w.dtype), w)


def pack_params(params, pack=PACK, matmul_dtype=jnp.bfloat16):
    """Pre-pack Linear weights block-diagonally (bf16) and tile biases (f32).

    Done once outside the hot path; the packed tensors are tiny (<1 MiB).
    """
    packed = {}
    for i in (1, 2, 3, 4):
        w = params[f"w{i}"]            # (in, out)
        b = params[f"b{i}"]            # (1, out)
        packed[f"w{i}"] = _block_diag(w, pack).astype(matmul_dtype)
        packed[f"b{i}"] = jnp.tile(b.astype(jnp.float32), (1, pack))
    return packed


def _vmem_capacity_bytes():
    try:
        return int(pltpu.get_tpu_info().vmem_capacity_bytes)
    except Exception:
        return 64 * 1024 * 1024        # conservative: v7x-class per-core VMEM


def _choose_tile_rows(rows, cap_rows, min_steps=4):
    """Packed-row batch tile: a multiple of 8 (f32 sublane rule) or == rows."""
    if rows > cap_rows:
        return cap_rows                # cap_rows is a multiple of 8
    if rows >= min_steps * 64:
        # Big single-shot batch: split into >= min_steps "parallel" grid steps
        # so a 2-TensorCore part (v7x) can shard them; on 1-TC parts this only
        # costs ~min_steps * 0.35 us of grid-step overhead.
        t = -(-rows // min_steps)
        return ((t + 7) // 8) * 8
    return rows


@functools.partial(jax.jit, static_argnames=("tile_rows",))
def net_forward(x, packed, *, tile_rows=None):
    """Forward pass.  x: (B, n_in) f32; packed: output of pack_params()."""
    B, n_in = x.shape
    p = packed["w1"].shape[0] // n_in            # pack factor (== PACK)
    n_out_p = packed["w4"].shape[1]
    n_out = n_out_p // p

    # Pad the batch to a multiple of p, then view x lane-dense (free, row-major).
    B_pad = ((B + p - 1) // p) * p
    if B_pad != B:
        x = jnp.pad(x, ((0, B_pad - B), (0, 0)))
    rows = B_pad // p
    xp = x.reshape(rows, p * n_in)

    # Generation-aware tile cap / VMEM limit (packed rows; 1 packed row = p batch rows).
    vmem_cap = _vmem_capacity_bytes()
    if vmem_cap >= 100 * 1024 * 1024:            # 128 MiB parts (v5e / v6e)
        cap_rows, vmem_limit = 4096, 96 * 1024 * 1024
    else:                                        # 64 MiB v7x-class
        cap_rows, vmem_limit = 2048, 48 * 1024 * 1024

    if tile_rows is None:
        trows = _choose_tile_rows(rows, cap_rows)
    else:
        trows = min(int(tile_rows), rows)
        if trows < rows and trows % 8 != 0:
            raise ValueError("tile_rows must be a multiple of 8 (or >= rows)")

    grid = (pl.cdiv(rows, trows),)

    # Weights/biases are tiny and use constant block indices => DMA'd once and
    # kept VMEM-resident across all grid steps.
    def resident(arr):
        nd = arr.ndim
        return pl.BlockSpec(arr.shape, lambda i: (0,) * nd)

    out_p = pl.pallas_call(
        _mlp_kernel,
        out_shape=jax.ShapeDtypeStruct((rows, n_out_p), x.dtype),
        grid=grid,
        in_specs=[
            pl.BlockSpec((trows, p * n_in), lambda i: (i, 0)),   # lane-dense x tile
            resident(packed["w1"]), resident(packed["b1"]),       # fc1 (packed)
            resident(packed["w2"]), resident(packed["b2"]),       # fc2
            resident(packed["w3"]), resident(packed["b3"]),       # fc3
            resident(packed["w4"]), resident(packed["b4"]),       # fc4
        ],
        out_specs=pl.BlockSpec((trows, n_out_p), lambda i: (i, 0)),
        compiler_params=pltpu.CompilerParams(
            dimension_semantics=("parallel",),
            vmem_limit_bytes=vmem_limit),
    )(xp, packed["w1"], packed["b1"], packed["w2"], packed["b2"],
      packed["w3"], packed["b3"], packed["w4"], packed["b4"])

    out = out_p.reshape(B_pad, n_out)            # free row-major reinterpretation
    return out[:B] if B_pad != B else out


def net_forward_ref(x, p):
    """Pure-JAX f32 reference with the original (unpacked) parameters."""
    h1 = jnp.maximum(x @ p["w1"] + p["b1"], 0.0)
    h2 = jnp.maximum(h1 @ p["w2"] + p["b2"], 0.0)
    h3 = jnp.maximum(h2 @ p["w3"] + p["b3"], 0.0)
    return h3 @ p["w4"] + p["b4"]


_net_forward_xla = jax.jit(net_forward_ref)


def net_forward_auto(x, params, packed, *, small_batch_threshold=128):
    """Tiny batches are cheaper as one fused XLA HLO than a pallas_call."""
    if x.shape[0] <= small_batch_threshold:
        return _net_forward_xla(x, params)
    return net_forward(x, packed)


def init_params(key, n_in, n_mid, n_out):
    """Deterministic init matching nn.Linear shapes; weights kept as (in, out)."""
    ks = jax.random.split(key, 8)

    def lin(kw, kb, fan_in, fan_out):
        bound = 1.0 / jnp.sqrt(fan_in)
        w = jax.random.uniform(kw, (fan_in, fan_out), jnp.float32, -bound, bound)
        b = jax.random.uniform(kb, (1, fan_out), jnp.float32, -bound, bound)
        return w, b

    w1, b1 = lin(ks[0], ks[1], n_in, n_mid)
    w2, b2 = lin(ks[2], ks[3], n_mid, n_mid)
    w3, b3 = lin(ks[4], ks[5], n_mid, n_mid)
    w4, b4 = lin(ks[6], ks[7], n_mid, n_out)
    return dict(w1=w1, b1=b1, w2=w2, b2=b2, w3=w3, b3=b3, w4=w4, b4=b4)


if __name__ == "__main__":
    key = jax.random.PRNGKey(0)
    n_in, n_mid, n_out = 16, 32, 4     # small RL-style state/action net
    kx, kx2, kp = jax.random.split(key, 3)
    params = init_params(kp, n_in, n_mid, n_out)
    packed = pack_params(params)

    # bf16 matmul inputs (f32 accumulation) => compare to the f32 reference
    # with a ~1e-2 tolerance, per the perf review.
    ATOL = RTOL = 2e-2

    # 1) Small batch: single grid step, packed rows == full dim.
    x_small = jax.random.normal(kx, (8, n_in), jnp.float32)
    out_small = jax.block_until_ready(net_forward(x_small, packed))
    ref_small = net_forward_ref(x_small, params)
    assert out_small.shape == (8, n_out)
    assert jnp.allclose(out_small, ref_small, atol=ATOL, rtol=RTOL), float(
        jnp.max(jnp.abs(out_small - ref_small)))

    # 2) Multi-step grid with a ragged trailing block: 1000 rows -> 125 packed
    #    rows, tile_rows=32 -> 4 parallel grid steps (exercises the tiled,
    #    megacore-shardable path).
    x_big = jax.random.normal(kx2, (1000, n_in), jnp.float32)
    out_big = jax.block_until_ready(net_forward(x_big, packed, tile_rows=32))
    ref_big = net_forward_ref(x_big, params)
    assert out_big.shape == (1000, n_out)
    assert jnp.allclose(out_big, ref_big, atol=ATOL, rtol=RTOL), float(
        jnp.max(jnp.abs(out_big - ref_big)))

    print("KERNEL_OK")
</pallas_src>

<mosaic_0001>
module attributes {stable_mosaic.version = 11 : i64} {
  func.func @_mlp_kernel(%arg0: i32, %arg1: memref<1x128xf32, #tpu.memory_space<vmem>>, %arg2: memref<128x256xbf16, #tpu.memory_space<vmem>>, %arg3: memref<1x256xf32, #tpu.memory_space<vmem>>, %arg4: memref<256x256xbf16, #tpu.memory_space<vmem>>, %arg5: memref<1x256xf32, #tpu.memory_space<vmem>>, %arg6: memref<256x256xbf16, #tpu.memory_space<vmem>>, %arg7: memref<1x256xf32, #tpu.memory_space<vmem>>, %arg8: memref<256x32xbf16, #tpu.memory_space<vmem>>, %arg9: memref<1x32xf32, #tpu.memory_space<vmem>>, %arg10: memref<1x32xf32, #tpu.memory_space<vmem>>) attributes {dimension_semantics = [#tpu.dimension_semantics<parallel>], iteration_bounds = array<i64: 1>, scalar_prefetch = 0 : i64, scratch_operands = 0 : i64, tpu.core_type = #tpu.core_type<tc>, window_params = [{transform_indices = @transform_0, window_bounds = array<i64: 1, 128>}, {pipeline_mode = #tpu.pipeline_mode<synchronous>, transform_indices = @transform_1, window_bounds = array<i64: 128, 256>}, {pipeline_mode = #tpu.pipeline_mode<synchronous>, transform_indices = @transform_2, window_bounds = array<i64: 1, 256>}, {pipeline_mode = #tpu.pipeline_mode<synchronous>, transform_indices = @transform_3, window_bounds = array<i64: 256, 256>}, {pipeline_mode = #tpu.pipeline_mode<synchronous>, transform_indices = @transform_4, window_bounds = array<i64: 1, 256>}, {pipeline_mode = #tpu.pipeline_mode<synchronous>, transform_indices = @transform_5, window_bounds = array<i64: 256, 256>}, {pipeline_mode = #tpu.pipeline_mode<synchronous>, transform_indices = @transform_6, window_bounds = array<i64: 1, 256>}, {pipeline_mode = #tpu.pipeline_mode<synchronous>, transform_indices = @transform_7, window_bounds = array<i64: 256, 32>}, {pipeline_mode = #tpu.pipeline_mode<synchronous>, transform_indices = @transform_8, window_bounds = array<i64: 1, 32>}, {transform_indices = @transform_9, window_bounds = array<i64: 1, 32>}]} {
    %c0 = arith.constant 0 : index
    %c0_0 = arith.constant 0 : index
    %0 = vector.load %arg1[%c0, %c0_0] : memref<1x128xf32, #tpu.memory_space<vmem>>, vector<1x128xf32>
    %1 = arith.truncf %0 : vector<1x128xf32> to vector<1x128xbf16>
    %c0_1 = arith.constant 0 : index
    %c0_2 = arith.constant 0 : index
    %2 = vector.load %arg2[%c0_1, %c0_2] : memref<128x256xbf16, #tpu.memory_space<vmem>>, vector<128x256xbf16>
    %cst = arith.constant dense<0.000000e+00> : vector<1x256xf32>
    %3 = tpu.matmul %1, %2, %cst {dimension_numbers = #tpu.dot_dimension_numbers<[1], [0], [0], [1], [0, 0, 1, 1], [], []>} : vector<1x128xbf16>, vector<128x256xbf16>, vector<1x256xf32> -> vector<1x256xf32>
    %c0_3 = arith.constant 0 : index
    %c0_4 = arith.constant 0 : index
    %4 = vector.load %arg3[%c0_3, %c0_4] : memref<1x256xf32, #tpu.memory_space<vmem>>, vector<1x256xf32>
    %5 = arith.addf %3, %4 : vector<1x256xf32>
    %cst_5 = arith.constant 0.000000e+00 : f32
    %6 = vector.broadcast %cst_5 : f32 to vector<1x256xf32>
    %7 = arith.maximumf %5, %6 : vector<1x256xf32>
    %8 = arith.truncf %7 : vector<1x256xf32> to vector<1x256xbf16>
    %c0_6 = arith.constant 0 : index
    %c0_7 = arith.constant 0 : index
    %9 = vector.load %arg4[%c0_6, %c0_7] : memref<256x256xbf16, #tpu.memory_space<vmem>>, vector<256x256xbf16>
    %cst_8 = arith.constant dense<0.000000e+00> : vector<1x256xf32>
    %10 = tpu.matmul %8, %9, %cst_8 {dimension_numbers = #tpu.dot_dimension_numbers<[1], [0], [0], [1], [0, 0, 1, 1], [], []>} : vector<1x256xbf16>, vector<256x256xbf16>, vector<1x256xf32> -> vector<1x256xf32>
    %c0_9 = arith.constant 0 : index
    %c0_10 = arith.constant 0 : index
    %11 = vector.load %arg5[%c0_9, %c0_10] : memref<1x256xf32, #tpu.memory_space<vmem>>, vector<1x256xf32>
    %12 = arith.addf %10, %11 : vector<1x256xf32>
    %cst_11 = arith.constant 0.000000e+00 : f32
    %13 = vector.broadcast %cst_11 : f32 to vector<1x256xf32>
    %14 = arith.maximumf %12, %13 : vector<1x256xf32>
    %15 = arith.truncf %14 : vector<1x256xf32> to vector<1x256xbf16>
    %c0_12 = arith.constant 0 : index
    %c0_13 = arith.constant 0 : index
    %16 = vector.load %arg6[%c0_12, %c0_13] : memref<256x256xbf16, #tpu.memory_space<vmem>>, vector<256x256xbf16>
    %cst_14 = arith.constant dense<0.000000e+00> : vector<1x256xf32>
    %17 = tpu.matmul %15, %16, %cst_14 {dimension_numbers = #tpu.dot_dimension_numbers<[1], [0], [0], [1], [0, 0, 1, 1], [], []>} : vector<1x256xbf16>, vector<256x256xbf16>, vector<1x256xf32> -> vector<1x256xf32>
    %c0_15 = arith.constant 0 : index
    %c0_16 = arith.constant 0 : index
    %18 = vector.load %arg7[%c0_15, %c0_16] : memref<1x256xf32, #tpu.memory_space<vmem>>, vector<1x256xf32>
    %19 = arith.addf %17, %18 : vector<1x256xf32>
    %cst_17 = arith.constant 0.000000e+00 : f32
    %20 = vector.broadcast %cst_17 : f32 to vector<1x256xf32>
    %21 = arith.maximumf %19, %20 : vector<1x256xf32>
    %22 = arith.truncf %21 : vector<1x256xf32> to vector<1x256xbf16>
    %c0_18 = arith.constant 0 : index
    %c0_19 = arith.constant 0 : index
    %23 = vector.load %arg8[%c0_18, %c0_19] : memref<256x32xbf16, #tpu.memory_space<vmem>>, vector<256x32xbf16>
    %cst_20 = arith.constant dense<0.000000e+00> : vector<1x32xf32>
    %24 = tpu.matmul %22, %23, %cst_20 {dimension_numbers = #tpu.dot_dimension_numbers<[1], [0], [0], [1], [0, 0, 1, 1], [], []>} : vector<1x256xbf16>, vector<256x32xbf16>, vector<1x32xf32> -> vector<1x32xf32>
    %c0_21 = arith.constant 0 : index
    %c0_22 = arith.constant 0 : index
    %25 = vector.load %arg9[%c0_21, %c0_22] : memref<1x32xf32, #tpu.memory_space<vmem>>, vector<1x32xf32>
    %26 = arith.addf %24, %25 : vector<1x32xf32>
    %c0_23 = arith.constant 0 : index
    %c0_24 = arith.constant 0 : index
    %27 = vector.load %arg10[%c0_23, %c0_24] : memref<1x32xf32, #tpu.memory_space<vmem>>, vector<1x32xf32>
    tpu.vector_store %arg10[%c0_23, %c0_24], %26 {strides = array<i32>} : memref<1x32xf32, #tpu.memory_space<vmem>>, vector<1x32xf32>,
    return
  }
  func.func @transform_0(%arg0: i32) -> (i32, i32) {
    %c0_i32 = arith.constant 0 : i32
    %c0_i32_0 = arith.constant 0 : i32
    return %arg0, %c0_i32 : i32, i32
  }
  func.func @transform_1(%arg0: i32) -> (i32, i32) {
    %c0_i32 = arith.constant 0 : i32
    %c0_i32_0 = arith.constant 0 : i32
    %c0_i32_1 = arith.constant 0 : i32
    return %c0_i32, %c0_i32_0 : i32, i32
  }
  func.func @transform_2(%arg0: i32) -> (i32, i32) {
    %c0_i32 = arith.constant 0 : i32
    %c0_i32_0 = arith.constant 0 : i32
    %c0_i32_1 = arith.constant 0 : i32
    return %c0_i32, %c0_i32_0 : i32, i32
  }
  func.func @transform_3(%arg0: i32) -> (i32, i32) {
    %c0_i32 = arith.constant 0 : i32
    %c0_i32_0 = arith.constant 0 : i32
    %c0_i32_1 = arith.constant 0 : i32
    return %c0_i32, %c0_i32_0 : i32, i32
  }
  func.func @transform_4(%arg0: i32) -> (i32, i32) {
    %c0_i32 = arith.constant 0 : i32
    %c0_i32_0 = arith.constant 0 : i32
    %c0_i32_1 = arith.constant 0 : i32
    return %c0_i32, %c0_i32_0 : i32, i32
  }
  func.func @transform_5(%arg0: i32) -> (i32, i32) {
    %c0_i32 = arith.constant 0 : i32
    %c0_i32_0 = arith.constant 0 : i32
    %c0_i32_1 = arith.constant 0 : i32
    return %c0_i32, %c0_i32_0 : i32, i32
  }
  func.func @transform_6(%arg0: i32) -> (i32, i32) {
    %c0_i32 = arith.constant 0 : i32
    %c0_i32_0 = arith.constant 0 : i32
    %c0_i32_1 = arith.constant 0 : i32
    return %c0_i32, %c0_i32_0 : i32, i32
  }
  func.func @transform_7(%arg0: i32) -> (i32, i32) {
    %c0_i32 = arith.constant 0 : i32
    %c0_i32_0 = arith.constant 0 : i32
    %c0_i32_1 = arith.constant 0 : i32
    return %c0_i32, %c0_i32_0 : i32, i32
  }
  func.func @transform_8(%arg0: i32) -> (i32, i32) {
    %c0_i32 = arith.constant 0 : i32
    %c0_i32_0 = arith.constant 0 : i32
    %c0_i32_1 = arith.constant 0 : i32
    return %c0_i32, %c0_i32_0 : i32, i32
  }
  func.func @transform_9(%arg0: i32) -> (i32, i32) {
    %c0_i32 = arith.constant 0 : i32
    %c0_i32_0 = arith.constant 0 : i32
    return %arg0, %c0_i32 : i32, i32
  }
}

</mosaic_0001>

<bundles_post_ra>
// kernel: net_forward.1
= control target key start
LH: loop header
LB: loop body
LE: loop exit
PB: predicated region body
PF: predicated region fallthrough
CT: control target
= control target key end

     0   :  { %14 = vsyncpa [#allocation3], 0  ;;  %s1627_s0 = inlined_call_operand.vmem [shape: f32[1,128], index: 0, kind: input, shape index: {}]   ;;  %s1628_s1 = inlined_call_operand.vmem [shape: bf16[128,256], index: 1, kind: input, shape index: {}]   ;;  %s1629_s2 = inlined_call_operand.vmem [shape: f32[1,256], index: 2, kind: input, shape index: {}]   ;;  %s1630_s3 = inlined_call_operand.hbm [shape: bf16[256,256], index: 3, kind: input, shape index: {}]   ;;  %s1631_s4 = inlined_call_operand.vmem [shape: f32[1,256], index: 4, kind: input, shape index: {}]   ;;  %s1632_s5 = inlined_call_operand.hbm [shape: bf16[256,256], index: 5, kind: input, shape index: {}]   ;;  %s1633_s6 = inlined_call_operand.vmem [shape: f32[1,256], index: 6, kind: input, shape index: {}]   ;;  %s1634_s7 = inlined_call_operand.vmem [shape: bf16[256,32], index: 7, kind: input, shape index: {}]   ;;  %s1635_s8 = inlined_call_operand.vmem [shape: f32[1,32], index: 8, kind: input, shape index: {}]   ;;  %s1636_s9 = inlined_call_operand.vmem [shape: f32[1,32], index: 9, kind: output, shape index: {}]  }
   0x1   :  { %s26_s11 = sshll.u32 %s1630_s3, 4  ;;  %s27_s11 = int_to_ptr.hbm [resolvable:$true] %s26_s11 }
   0x2   :  { %15 = vsyncpa [#allocation5], 0  ;;  %s1405_s12 = smov [#allocation2]   ;;  %s41_s16 = sshll.u32 %s1632_s5, 4  ;;  %s42_s16 = int_to_ptr.hbm [resolvable:$true] %s41_s16 }
   0x3   :  { %s28_s13 = sshll.u32 %s1405_s12, 4  ;;  %s1406_s17 = smov 128   ;;  %s29_s13 = int_to_ptr.vmem [resolvable:$true] %s28_s13 }
   0x4   :  { %s1407_s18 = smov 8   ;;  %s1408_s19 = smov [#allocation4]  }
   0x5   :  { %34 = dma.hbm_to_vmem [thread:$0]  %s27_s11, 4096, %s29_s13, [#allocation3], %s1406_s17, %s1406_s17, %s1407_s18  }
   0x6   :  { %s43_s20 = sshll.u32 %s1408_s19, 4  ;;  %s44_s20 = int_to_ptr.vmem [resolvable:$true] %s43_s20 }
   0x7   :  { %49 = dma.hbm_to_vmem [thread:$0]  %s42_s16, 4096, %s44_s20, [#allocation5], %s1406_s17, %s1406_s17, %s1407_s18  }
   0x8   :  { %1401 = dma.done.wait [#allocation3], 4096  }
   0x9   :  { %1402 = vsyncadd [#allocation3], 4294963200 }
   0xa   :  { %1403 = dma.done.wait [#allocation5], 4096  }
   0xb   :  { %1404 = vsyncadd [#allocation5], 4294963200  ;;  %v927_v0 = vld [vmem:[%s1628_s1 + $0x70] sm:$0xf]  ;;  %v1268_v1 = vld [vmem:[%s1628_s1 + $0x74] sm:$0xf0] }
   0xc   :  { %v1267_v2 = vld [vmem:[%s1628_s1 + $0x74] sm:$0xf]  ;;  %v928_v3 = vor.u32 %v1268_v1, %v927_v0  ;;  %v929_v4 = vld [vmem:[%s1628_s1 + $0x78] sm:$0xf0]  ;;  %v919_v5 = vld [vmem:[%s1628_s1 + $0x60] sm:$0xf] }
   0xd   :  { %v1266_v6 = vld [vmem:[%s1628_s1 + $0x64] sm:$0xf0]  ;;  %v932_v7 = vor.u32 %v1267_v2, %v929_v4  ;;  %v1265_v8 = vld [vmem:[%s1628_s1 + $0x64] sm:$0xf]  ;;  %v921_v9 = vld [vmem:[%s1628_s1 + $0x68] sm:$0xf0] }
   0xe   :  { %168 = vmatpush.bf16.msra.mxu0 %v928_v3  ;;  %v920_v10 = vor.u32 %v1266_v6, %v919_v5  ;;  %v924_v11 = vor.u32 %v1265_v8, %v921_v9  ;;  %v911_v12 = vld [vmem:[%s1628_s1 + $0x50] sm:$0xf]  ;;  %v1264_v13 = vld [vmem:[%s1628_s1 + $0x54] sm:$0xf0]  ;;  %v1263_v14 = vld [vmem:[%s1628_s1 + $0x54] sm:$0xf] }
   0xf   :  { %181 = vmatpush.bf16.msra.mxu1 %v932_v7  ;;  %v913_v15 = vld [vmem:[%s1628_s1 + $0x58] sm:$0xf0]  ;;  %v912_v16 = vor.u32 %v1264_v13, %v911_v12  ;;  %v903_v18 = vld [vmem:[%s1628_s1 + $0x40] sm:$0xf]  ;;  %v1262_v19 = vld [vmem:[%s1628_s1 + $0x44] sm:$0xf0] }
  0x10   :  { %v916_v17 = vor.u32 %v1263_v14, %v913_v15  ;;  %v1261_v20 = vld [vmem:[%s1628_s1 + $0x44] sm:$0xf]  ;;  %v905_v21 = vld [vmem:[%s1628_s1 + $0x48] sm:$0xf0]  ;;  %v904_v22 = vor.u32 %v1262_v19, %v903_v18  ;;  %v991_v23 = vld [vmem:[#allocation2 + $0x70] sm:$0xf] }
  0x11   :  { %v1284_v24 = vld [vmem:[#allocation2 + $0x74] sm:$0xf0]  ;;  %v1055_v25 = vld [vmem:[#allocation2 + $0xf0] sm:$0xf]  ;;  %v908_v26 = vor.u32 %v1261_v20, %v905_v21  ;;  %v1259_v31 = vld [vmem:[%s1628_s1 + $0x34] sm:$0xf] }
  0x12   :  { %169 = vmatpush.bf16.msra.mxu0 %v920_v10  ;;  %v895_v27 = vld [vmem:[%s1628_s1 + $0x30] sm:$0xf]  ;;  %v1260_v28 = vld [vmem:[%s1628_s1 + $0x34] sm:$0xf0]  ;;  %v992_v29 = vor.u32 %v1284_v24, %v991_v23  ;;  %v897_v32 = vld [vmem:[%s1628_s1 + $0x38] sm:$0xf0] }
  0x13   :  { %182 = vmatpush.bf16.msra.mxu1 %v924_v11  ;;  %v1300_v30 = vld [vmem:[#allocation2 + $0xf4] sm:$0xf0]  ;;  %v983_v34 = vld [vmem:[#allocation2 + $0x60] sm:$0xf]  ;;  %v1282_v35 = vld [vmem:[#allocation2 + $0x64] sm:$0xf0]  ;;  %v896_v38 = vor.u32 %v1260_v28, %v895_v27  ;;  %v900_v43 = vor.u32 %v1259_v31, %v897_v32 }
  0x14   :  { %v1056_v33 = vor.u32 %v1300_v30, %v1055_v25  ;;  %396 = vmatpush.bf16.msra.mxu2 %v992_v29  ;;  %v1047_v36 = vld [vmem:[#allocation2 + $0xe0] sm:$0xf]  ;;  %v1298_v37 = vld [vmem:[#allocation2 + $0xe4] sm:$0xf0]  ;;  %v984_v41 = vor.u32 %v1282_v35, %v983_v34  ;;  %v1257_v44 = vld [vmem:[%s1628_s1 + $0x24] sm:$0xf] }
  0x15   :  { %v887_v39 = vld [vmem:[%s1628_s1 + $0x20] sm:$0xf]  ;;  %v1258_v40 = vld [vmem:[%s1628_s1 + $0x24] sm:$0xf0]  ;;  %v1048_v42 = vor.u32 %v1298_v37, %v1047_v36  ;;  %v975_v45 = vld [vmem:[#allocation2 + $0x50] sm:$0xf] }
  0x16   :  { %170 = vmatpush.bf16.msra.mxu0 %v912_v16  ;;  %409 = vmatpush.bf16.msra.mxu3 %v1056_v33  ;;  %v1280_v46 = vld [vmem:[#allocation2 + $0x54] sm:$0xf0]  ;;  %v889_v47 = vld [vmem:[%s1628_s1 + $0x28] sm:$0xf0]  ;;  %v1039_v48 = vld [vmem:[#allocation2 + $0xd0] sm:$0xf]  ;;  %v888_v51 = vor.u32 %v1258_v40, %v887_v39 }
  0x17   :  { %183 = vmatpush.bf16.msra.mxu1 %v916_v17  ;;  %v1296_v49 = vld [vmem:[#allocation2 + $0xd4] sm:$0xf0]  ;;  %v976_v50 = vor.u32 %v1280_v46, %v975_v45  ;;  %v879_v52 = vld [vmem:[%s1628_s1 + $0x10] sm:$0xf]  ;;  %v967_v54 = vld [vmem:[#allocation2 + $0x40] sm:$0xf]  ;;  %v892_v56 = vor.u32 %v1257_v44, %v889_v47 }
  0x18   :  { %397 = vmatpush.bf16.msra.mxu2 %v984_v41  ;;  %v1040_v53 = vor.u32 %v1296_v49, %v1039_v48  ;;  %v1278_v55 = vld [vmem:[#allocation2 + $0x44] sm:$0xf0]  ;;  %v1256_v57 = vld [vmem:[%s1628_s1 + $0x14] sm:$0xf0]  ;;  %v1031_v58 = vld [vmem:[#allocation2 + $0xc0] sm:$0xf] }
  0x19   :  { %v1294_v59 = vld [vmem:[#allocation2 + $0xc4] sm:$0xf0]  ;;  %v1255_v60 = vld [vmem:[%s1628_s1 + $0x14] sm:$0xf]  ;;  %v881_v61 = vld [vmem:[%s1628_s1 + $0x18] sm:$0xf0]  ;;  %v968_v63 = vor.u32 %v1278_v55, %v967_v54  ;;  %v880_v0 = vor.u32 %v1256_v57, %v879_v52 }
  0x1a   :  { %171 = vmatpush.bf16.msra.mxu0 %v904_v22  ;;  %410 = vmatpush.bf16.msra.mxu3 %v1048_v42  ;;  %v871_v62 = vld [vmem:[%s1628_s1] sm:$0xf]  ;;  %v1254_v1 = vld [vmem:[%s1628_s1 + $0x4] sm:$0xf0]  ;;  %v1032_v2 = vor.u32 %v1294_v59, %v1031_v58  ;;  %v959_v3 = vld [vmem:[#allocation2 + $0x30] sm:$0xf]  ;;  %v884_v5 = vor.u32 %v1255_v60, %v881_v61 }
  0x1b   :  { %184 = vmatpush.bf16.msra.mxu1 %v908_v26  ;;  %v1276_v4 = vld [vmem:[#allocation2 + $0x34] sm:$0xf0]  ;;  %v1253_v6 = vld [vmem:[%s1628_s1 + $0x4] sm:$0xf]  ;;  %v1023_v7 = vld [vmem:[#allocation2 + $0xb0] sm:$0xf]  ;;  %v872_v15 = vor.u32 %v1254_v1, %v871_v62 }
  0x1c   :  { %398 = vmatpush.bf16.msra.mxu2 %v976_v50  ;;  %v1292_v8 = vld [vmem:[#allocation2 + $0xb4] sm:$0xf0]  ;;  %v873_v9 = vld [vmem:[%s1628_s1 + $0x8] sm:$0xf0]  ;;  %v1283_v10 = vld [vmem:[#allocation2 + $0x74] sm:$0xf]  ;;  %v960_v14 = vor.u32 %v1276_v4, %v959_v3 }
  0x1d   :  { %v993_v11 = vld [vmem:[#allocation2 + $0x78] sm:$0xf0]  ;;  %v1299_v12 = vld [vmem:[#allocation2 + $0xf4] sm:$0xf]  ;;  %v64_v16 = vld [vmem:[%s1627_s0] sm:$0x1]  ;;  %v1024_v17 = vor.u32 %v1292_v8, %v1023_v7  ;;  %v876_v20 = vor.u32 %v1253_v6, %v873_v9 }
  0x1e   :  { %172 = vmatpush.bf16.msra.mxu0 %v896_v38  ;;  %411 = vmatpush.bf16.msra.mxu3 %v1040_v53  ;;  %v1057_v13 = vld [vmem:[#allocation2 + $0xf8] sm:$0xf0]  ;;  %v951_v18 = vld [vmem:[#allocation2 + $0x20] sm:$0xf]  ;;  %v1274_v19 = vld [vmem:[#allocation2 + $0x24] sm:$0xf0]  ;;  %v996_v21 = vor.u32 %v1283_v10, %v993_v11  ;;  %v65_v27 = vpack.c.bf16 %v64_v16, %v64_v16 }
  0x1f   :  { %185 = vmatpush.bf16.msra.mxu1 %v900_v43  ;;  %v1015_v22 = vld [vmem:[#allocation2 + $0xa0] sm:$0xf]  ;;  %v1290_v23 = vld [vmem:[#allocation2 + $0xa4] sm:$0xf0]  ;;  %v1060_v24 = vor.u32 %v1299_v12, %v1057_v13  ;;  %v1281_v25 = vld [vmem:[#allocation2 + $0x64] sm:$0xf]  ;;  %v952_v30 = vor.u32 %v1274_v19, %v951_v18 }
  0x20   :  { %399 = vmatpush.bf16.msra.mxu2 %v968_v63  ;;  %v985_v26 = vld [vmem:[#allocation2 + $0x68] sm:$0xf0]  ;;  %v1297_v28 = vld [vmem:[#allocation2 + $0xe4] sm:$0xf]  ;;  %v1016_v31 = vor.u32 %v1290_v23, %v1015_v22  ;;  %v1279_v34 = vld [vmem:[#allocation2 + $0x54] sm:$0xf] }
  0x21   :  { %v1049_v29 = vld [vmem:[#allocation2 + $0xe8] sm:$0xf0]  ;;  %v988_v32 = vor.u32 %v1281_v25, %v985_v26  ;;  %v977_v35 = vld [vmem:[#allocation2 + $0x58] sm:$0xf0]  ;;  %v1295_v36 = vld [vmem:[#allocation2 + $0xd4] sm:$0xf] }
  0x22   :  { %173 = vmatpush.bf16.msra.mxu0 %v888_v51  ;;  %412 = vmatpush.bf16.msra.mxu3 %v1032_v2  ;;  %v1052_v33 = vor.u32 %v1297_v28, %v1049_v29  ;;  %v1041_v37 = vld [vmem:[#allocation2 + $0xd8] sm:$0xf0]  ;;  %v980_v38 = vor.u32 %v1279_v34, %v977_v35  ;;  %v1277_v40 = vld [vmem:[#allocation2 + $0x44] sm:$0xf]  ;;  %v969_v41 = vld [vmem:[#allocation2 + $0x48] sm:$0xf0] }
  0x23   :  { %186 = vmatpush.bf16.msra.mxu1 %v892_v56  ;;  %v1044_v39 = vor.u32 %v1295_v36, %v1041_v37  ;;  %v1293_v42 = vld [vmem:[#allocation2 + $0xc4] sm:$0xf]  ;;  %v1033_v43 = vld [vmem:[#allocation2 + $0xc8] sm:$0xf0]  ;;  %v972_v44 = vor.u32 %v1277_v40, %v969_v41  ;;  %v1275_v46 = vld [vmem:[#allocation2 + $0x34] sm:$0xf] }
  0x24   :  { %400 = vmatpush.bf16.msra.mxu2 %v960_v14  ;;  %v1036_v45 = vor.u32 %v1293_v42, %v1033_v43  ;;  %v961_v47 = vld [vmem:[#allocation2 + $0x38] sm:$0xf0]  ;;  %v1291_v48 = vld [vmem:[#allocation2 + $0xb4] sm:$0xf]  ;;  %v1273_v52 = vld [vmem:[#allocation2 + $0x24] sm:$0xf] }
  0x25   :  { %v1025_v49 = vld [vmem:[#allocation2 + $0xb8] sm:$0xf0]  ;;  %v964_v50 = vor.u32 %v1275_v46, %v961_v47  ;;  %v953_v53 = vld [vmem:[#allocation2 + $0x28] sm:$0xf0]  ;;  %v1289_v54 = vld [vmem:[#allocation2 + $0xa4] sm:$0xf] }
  0x26   :  { %174 = vmatpush.bf16.msra.mxu0 %v880_v0  ;;  %413 = vmatpush.bf16.msra.mxu3 %v1024_v17  ;;  %v1028_v51 = vor.u32 %v1291_v48, %v1025_v49  ;;  %v1017_v55 = vld [vmem:[#allocation2 + $0xa8] sm:$0xf0]  ;;  %v956_v56 = vor.u32 %v1273_v52, %v953_v53  ;;  %v943_v58 = vld [vmem:[#allocation2 + $0x10] sm:$0xf]  ;;  %v1272_v59 = vld [vmem:[#allocation2 + $0x14] sm:$0xf0] }
  0x27   :  { %187 = vmatpush.bf16.msra.mxu1 %v884_v5  ;;  %v1020_v57 = vor.u32 %v1289_v54, %v1017_v55  ;;  %v1007_v60 = vld [vmem:[#allocation2 + $0x90] sm:$0xf]  ;;  %v944_v61 = vor.u32 %v1272_v59, %v943_v58  ;;  %v1288_v62 = vld [vmem:[#allocation2 + $0x94] sm:$0xf0]  ;;  %v1271_v63 = vld [vmem:[#allocation2 + $0x14] sm:$0xf] }
  0x28   :  { %401 = vmatpush.bf16.msra.mxu2 %v952_v30  ;;  %v945_v0 = vld [vmem:[#allocation2 + $0x18] sm:$0xf0]  ;;  %v1008_v1 = vor.u32 %v1288_v62, %v1007_v60  ;;  %v1287_v3 = vld [vmem:[#allocation2 + $0x94] sm:$0xf]  ;;  %v935_v6 = vld [vmem:[#allocation2] sm:$0xf] }
  0x29   :  { %v948_v2 = vor.u32 %v1271_v63, %v945_v0  ;;  %v1009_v4 = vld [vmem:[#allocation2 + $0x98] sm:$0xf0]  ;;  %v1270_v7 = vld [vmem:[#allocation2 + $0x4] sm:$0xf0]  ;;  %v999_v8 = vld [vmem:[#allocation2 + $0x80] sm:$0xf] }
  0x2a   :  { %175 = vmatpush.bf16.msra.mxu0 %v872_v15  ;;  %414 = vmatpush.bf16.msra.mxu3 %v1016_v31  ;;  %v1012_v5 = vor.u32 %v1287_v3, %v1009_v4  ;;  %v936_v9 = vor.u32 %v1270_v7, %v935_v6  ;;  %v1286_v10 = vld [vmem:[#allocation2 + $0x84] sm:$0xf0]  ;;  %v1269_v11 = vld [vmem:[#allocation2 + $0x4] sm:$0xf]  ;;  %v937_v12 = vld [vmem:[#allocation2 + $0x8] sm:$0xf0] }
  0x2b   :  { %188 = vmatpush.bf16.msra.mxu1 %v876_v20  ;;  %v1000_v13 = vor.u32 %v1286_v10, %v999_v8  ;;  %v940_v14 = vor.u32 %v1269_v11, %v937_v12  ;;  %v1285_v15 = vld [vmem:[#allocation2 + $0x84] sm:$0xf]  ;;  %v1001_v16 = vld [vmem:[#allocation2 + $0x88] sm:$0xf0]  ;;  %v1183_v18 = vld [vmem:[#allocation4 + $0xf0] sm:$0xf] }
  0x2c   :  { %402 = vmatpush.bf16.msra.mxu2 %v944_v61  ;;  %v1004_v17 = vor.u32 %v1285_v15, %v1001_v16  ;;  %v1332_v19 = vld [vmem:[#allocation4 + $0xf4] sm:$0xf0]  ;;  %v1331_v20 = vld [vmem:[#allocation4 + $0xf4] sm:$0xf]  ;;  %v1185_v22 = vld [vmem:[#allocation4 + $0xf8] sm:$0xf0] }
  0x2d   :  { %176 = vmatmul.bf16.vlgmr.msra.gmra.mxu0 %v65_v27  ;;  %v1175_v23 = vld [vmem:[#allocation4 + $0xe0] sm:$0xf]  ;;  %v1188_v25 = vor.u32 %v1331_v20, %v1185_v22  ;;  %v1329_v26 = vld [vmem:[#allocation4 + $0xe4] sm:$0xf]  ;;  %v1119_v28 = vld [vmem:[#allocation4 + $0x70] sm:$0xf] }
  0x2e   :  { %422 = vmatpush.bf16.msrb.mxu0 %v996_v21  ;;  %189 = vmatmul.bf16.vlgmr.msra.gmra.mxu1 %v65_v27  ;;  %v1184_v21 = vor.u32 %v1332_v19, %v1183_v18  ;;  %v1177_v27 = vld [vmem:[#allocation4 + $0xe8] sm:$0xf0]  ;;  %v1316_v30 = vld [vmem:[#allocation4 + $0x74] sm:$0xf0]  ;;  %v1315_v31 = vld [vmem:[#allocation4 + $0x74] sm:$0xf] }
  0x2f   :  { %435 = vmatpush.bf16.msrb.mxu1 %v1060_v24  ;;  %415 = vmatpush.bf16.msra.mxu3 %v1008_v1  ;;  %v1330_v24 = vld [vmem:[#allocation4 + $0xe4] sm:$0xf0]  ;;  %v1120_v34 = vor.u32 %v1316_v30, %v1119_v28  ;;  %v1167_v36 = vld [vmem:[#allocation4 + $0xd0] sm:$0xf]  ;;  %v1328_v37 = vld [vmem:[#allocation4 + $0xd4] sm:$0xf0] }
  0x30   :  { %403 = vmatpush.bf16.msra.mxu2 %v936_v9  ;;  %v1176_v29 = vor.u32 %v1330_v24, %v1175_v23  ;;  %v1111_v40 = vld [vmem:[#allocation4 + $0x60] sm:$0xf]  ;;  %v1314_v41 = vld [vmem:[#allocation4 + $0x64] sm:$0xf0]  ;;  %v1313_v43 = vld [vmem:[#allocation4 + $0x64] sm:$0xf] }
  0x31   :  { %v1112_v42 = vor.u32 %v1314_v41, %v1111_v40  ;;  %v1159_v47 = vld [vmem:[#allocation4 + $0xc0] sm:$0xf]  ;;  %v1326_v48 = vld [vmem:[#allocation4 + $0xc4] sm:$0xf0]  ;;  %v1311_v52 = vld [vmem:[#allocation4 + $0x54] sm:$0xf] }
  0x32   :  { %423 = vmatpush.bf16.msrb.mxu0 %v988_v32  ;;  %v1121_v32 = vld [vmem:[#allocation4 + $0x78] sm:$0xf0]  ;;  %v1325_v53 = vld [vmem:[#allocation4 + $0xc4] sm:$0xf]  ;;  %v1161_v54 = vld [vmem:[#allocation4 + $0xc8] sm:$0xf0]  ;;  %v1160_v59 = vor.u32 %v1326_v48, %v1159_v47 }
  0x33   :  { %436 = vmatpush.bf16.msrb.mxu1 %v1052_v33  ;;  %416 = vmatpush.bf16.msra.mxu3 %v1000_v13  ;;  %v1180_v33 = vor.u32 %v1329_v26, %v1177_v27  ;;  %v1124_v35 = vor.u32 %v1315_v31, %v1121_v32  ;;  %v1105_v55 = vld [vmem:[#allocation4 + $0x58] sm:$0xf0]  ;;  %v1095_v58 = vld [vmem:[#allocation4 + $0x40] sm:$0xf]  ;;  %v1310_v60 = vld [vmem:[#allocation4 + $0x44] sm:$0xf0]  ;;  %v1164_v63 = vor.u32 %v1325_v53, %v1161_v54 }
  0x34   :  { %650 = vmatpush.bf16.msrb.mxu2 %v1120_v34  ;;  %v1309_v61 = vld [vmem:[#allocation4 + $0x44] sm:$0xf]  ;;  %v1097_v62 = vld [vmem:[#allocation4 + $0x48] sm:$0xf0]  ;;  %v1151_v0 = vld [vmem:[#allocation4 + $0xb0] sm:$0xf]  ;;  %v1096_v4 = vor.u32 %v1310_v60, %v1095_v58 }
  0x35   :  { %v1324_v1 = vld [vmem:[#allocation4 + $0xb4] sm:$0xf0]  ;;  %v1153_v3 = vld [vmem:[#allocation4 + $0xb8] sm:$0xf0]  ;;  %v1143_v8 = vld [vmem:[#allocation4 + $0xa0] sm:$0xf] }
  0x36   :  { %424 = vmatpush.bf16.msrb.mxu0 %v980_v38  ;;  %v1327_v38 = vld [vmem:[#allocation4 + $0xd4] sm:$0xf]  ;;  %v1152_v6 = vor.u32 %v1324_v1, %v1151_v0  ;;  %v1322_v9 = vld [vmem:[#allocation4 + $0xa4] sm:$0xf0]  ;;  %v82_v10 = vld [vmem:[%s1629_s2] sm:$0x3] }
  0x37   :  { %437 = vmatpush.bf16.msrb.mxu1 %v1044_v39  ;;  %663 = vmatpush.bf16.msrb.mxu3 %v1184_v21  ;;  %v1169_v39 = vld [vmem:[#allocation4 + $0xd8] sm:$0xf0]  ;;  %v1321_v11 = vld [vmem:[#allocation4 + $0xa4] sm:$0xf]  ;;  %v1145_v12 = vld [vmem:[#allocation4 + $0xa8] sm:$0xf0]  ;;  %v1144_v13 = vor.u32 %v1322_v9, %v1143_v8 }
  0x38   :  { %v1172_v49 = vor.u32 %v1327_v38, %v1169_v39  ;;  %651 = vmatpush.bf16.msrb.mxu2 %v1112_v42  ;;  %v1148_v15 = vor.u32 %v1321_v11, %v1145_v12  ;;  %v165_v16 = vperm.slane %v82_v10, 1  ;;  %v1087_v27 = vld [vmem:[#allocation4 + $0x30] sm:$0xf]  ;;  %v1308_v28 = vld [vmem:[#allocation4 + $0x34] sm:$0xf0]  ;;  %vm861_vm0 = vcmask 253952  }
  0x39   :  { %v1088_v30 = vor.u32 %v1308_v28, %v1087_v27  ;;  %v1089_v31 = vld [vmem:[#allocation4 + $0x38] sm:$0xf0]  ;;  %v1320_v34 = vld [vmem:[#allocation4 + $0x94] sm:$0xf0]  ;;  %v1079_v39 = vld [vmem:[#allocation4 + $0x20] sm:$0xf] }
  0x3a   :  { %425 = vmatpush.bf16.msrb.mxu0 %v972_v44  ;;  %v1113_v44 = vld [vmem:[#allocation4 + $0x68] sm:$0xf0]  ;;  %v1306_v40 = vld [vmem:[#allocation4 + $0x24] sm:$0xf0]  ;;  %v1305_v41 = vld [vmem:[#allocation4 + $0x24] sm:$0xf] }
  0x3b   :  { %438 = vmatpush.bf16.msrb.mxu1 %v1036_v45  ;;  %664 = vmatpush.bf16.msrb.mxu3 %v1176_v29  ;;  %v1168_v45 = vor.u32 %v1328_v37, %v1167_v36  ;;  %v1116_v46 = vor.u32 %v1313_v43, %v1113_v44  ;;  %v1307_v29 = vld [vmem:[#allocation4 + $0x34] sm:$0xf]  ;;  %v1137_v37 = vld [vmem:[#allocation4 + $0x98] sm:$0xf0]  ;;  %v1080_v42 = vor.u32 %v1306_v40, %v1079_v39  ;;  %v1081_v43 = vld [vmem:[#allocation4 + $0x28] sm:$0xf0] }
  0x3c   :  { %v1092_v32 = vor.u32 %v1307_v29, %v1089_v31  ;;  %v1084_v44 = vor.u32 %v1305_v41, %v1081_v43  ;;  %v1317_v47 = vld [vmem:[#allocation4 + $0x84] sm:$0xf]  ;;  %v1303_v54 = vld [vmem:[#allocation4 + $0x14] sm:$0xf]  ;;  %v1302_v58 = vld [vmem:[#allocation4 + $0x4] sm:$0xf0] }
  0x3d   :  { %v1340_v0 = vld [vmem:[%s1634_s7 + $0x38] sm:$0xff]  ;;  %v1347_v1 = vld [vmem:[%s1634_s7 + $0x70] sm:$0xff]  ;;  %v1342_v29 = vld [vmem:[%s1634_s7 + $0x48] sm:$0xff] }
  0x3e   :  { %426 = vmatpush.bf16.msrb.mxu0 %v964_v50  ;;  %v1103_v50 = vld [vmem:[#allocation4 + $0x50] sm:$0xf]  ;;  %v1336_v28 = vld [vmem:[%s1634_s7 + $0x18] sm:$0xff]  ;;  %v1341_v31 = vld [vmem:[%s1634_s7 + $0x40] sm:$0xff] }
  0x3f   :  { %439 = vmatpush.bf16.msrb.mxu1 %v1028_v51  ;;  %v1312_v51 = vld [vmem:[#allocation4 + $0x54] sm:$0xf0]  ;;  %665 = vmatpush.bf16.msrb.mxu3 %v1168_v45  ;;  %v1127_v45 = vld [vmem:[#allocation4 + $0x80] sm:$0xf]  ;;  %v1343_v27 = vld [vmem:[%s1634_s7 + $0x50] sm:$0xff] }
  0x42   :  { %427 = vmatpush.bf16.msrb.mxu0 %v956_v56  ;;  %v1104_v56 = vor.u32 %v1312_v51, %v1103_v50  ;;  %v1071_v51 = vld [vmem:[#allocation4 + $0x10] sm:$0xf] }
  0x43   :  { %440 = vmatpush.bf16.msrb.mxu1 %v1020_v57  ;;  %v1108_v57 = vor.u32 %v1311_v52, %v1105_v55  ;;  %666 = vmatpush.bf16.msrb.mxu3 %v1160_v59  ;;  %v1304_v52 = vld [vmem:[#allocation4 + $0x14] sm:$0xf0]  ;;  %v1073_v55 = vld [vmem:[#allocation4 + $0x18] sm:$0xf0]  ;;  %v1301_v59 = vld [vmem:[#allocation4 + $0x4] sm:$0xf] }
  0x44   :  { %652 = vmatpush.bf16.msrb.mxu2 %v1104_v56  ;;  %v1072_v53 = vor.u32 %v1304_v52, %v1071_v51  ;;  %v1076_v56 = vor.u32 %v1303_v54, %v1073_v55  ;;  %v738_v54 = vld [vmem:[%s1635_s8] sm:$0x1] }
  0x46   :  { %428 = vmatpush.bf16.msrb.mxu0 %v948_v2  ;;  %v1323_v2 = vld [vmem:[#allocation4 + $0xb4] sm:$0xf] }
  0x47   :  { %441 = vmatpush.bf16.msrb.mxu1 %v1012_v5  ;;  %v1100_v5 = vor.u32 %v1309_v61, %v1097_v62  ;;  %v1156_v7 = vor.u32 %v1323_v2, %v1153_v3  ;;  %667 = vmatpush.bf16.msrb.mxu3 %v1152_v6  ;;  %v1065_v61 = vld [vmem:[#allocation4 + $0x8] sm:$0xf0]  ;;  %v1339_v2 = vld [vmem:[%s1634_s7 + $0x30] sm:$0xff]  ;;  %v230_v6 = vld [vmem:[%s1631_s4] sm:$0x3] }
  0x48   :  { %653 = vmatpush.bf16.msrb.mxu2 %v1096_v4  ;;  %v1068_v62 = vor.u32 %v1301_v59, %v1065_v61  ;;  %v1346_v3 = vld [vmem:[%s1634_s7 + $0x68] sm:$0xff]  ;;  %v392_v12 = vperm.slane %v230_v6, 0 }
  0x49   :  { %v1338_v4 = vld [vmem:[%s1634_s7 + $0x28] sm:$0xff] }
  0x4a   :  { %429 = vmatpush.bf16.msrb.mxu0 %v940_v14  ;;  %v164_v14 = vperm.slane %v82_v10, 0 }
  0x4b   :  { %442 = vmatpush.bf16.msrb.mxu1 %v1004_v17  ;;  %668 = vmatpush.bf16.msrb.mxu3 %v1144_v13 }
  0x4c   :  { %654 = vmatpush.bf16.msrb.mxu2 %v1088_v30  ;;  %v1335_v30 = vld [vmem:[%s1634_s7 + $0x10] sm:$0xff] }
  0x4e   :  { %676 = vmatpush.bf16.msra.mxu0 %v1124_v35  ;;  %v1319_v35 = vld [vmem:[#allocation4 + $0x94] sm:$0xf] }
  0x4f   :  { %689 = vmatpush.bf16.msra.mxu1 %v1188_v25  ;;  %v1140_v38 = vor.u32 %v1319_v35, %v1137_v37  ;;  %v484_v35 = vld [vmem:[%s1633_s6] sm:$0x3] }
  0x50   :  { %655 = vmatpush.bf16.msrb.mxu2 %v1080_v42  ;;  %v646_v42 = vperm.slane %v484_v35, 0 }
  0x52   :  { %677 = vmatpush.bf16.msra.mxu0 %v1116_v46  ;;  %v1318_v46 = vld [vmem:[#allocation4 + $0x84] sm:$0xf0] }
  0x53   :  { %690 = vmatpush.bf16.msra.mxu1 %v1180_v33  ;;  %v1135_v33 = vld [vmem:[#allocation4 + $0x90] sm:$0xf]  ;;  %v1128_v48 = vor.u32 %v1318_v46, %v1127_v45 }
  0x54   :  { %v1136_v36 = vor.u32 %v1320_v34, %v1135_v33  ;;  %656 = vmatpush.bf16.msrb.mxu2 %v1072_v53  ;;  %v1333_v33 = vld [vmem:[%s1634_s7] sm:$0xff] }
  0x56   :  { %678 = vmatpush.bf16.msra.mxu0 %v1108_v57  ;;  %669 = vmatpush.bf16.msrb.mxu3 %v1136_v36  ;;  %v1063_v57 = vld [vmem:[#allocation4] sm:$0xf]  ;;  %v647_v36 = vperm.slane %v484_v35, 1 }
  0x57   :  { %691 = vmatpush.bf16.msra.mxu1 %v1172_v49  ;;  %v1129_v49 = vld [vmem:[#allocation4 + $0x88] sm:$0xf0]  ;;  %v1064_v60 = vor.u32 %v1302_v58, %v1063_v57 }
  0x58   :  { %v1132_v50 = vor.u32 %v1317_v47, %v1129_v49 }
  0x59   :  { %657 = vmatpush.bf16.msrb.mxu2 %v1064_v60 }
  0x5a   :  { %679 = vmatpush.bf16.msra.mxu0 %v1100_v5  ;;  %670 = vmatpush.bf16.msrb.mxu3 %v1128_v48  ;;  %v1345_v5 = vld [vmem:[%s1634_s7 + $0x60] sm:$0xff] }
  0x5b   :  { %692 = vmatpush.bf16.msra.mxu1 %v1164_v63  ;;  %v1348_v63 = vld [vmem:[%s1634_s7 + $0x78] sm:$0xff] }
  0x5e   :  { %680 = vmatpush.bf16.msra.mxu0 %v1092_v32  ;;  %v1334_v32 = vld [vmem:[%s1634_s7 + $0x8] sm:$0xff] }
  0x5f   :  { %693 = vmatpush.bf16.msra.mxu1 %v1156_v7  ;;  %v393_v7 = vperm.slane %v230_v6, 1 }
  0x62   :  { %681 = vmatpush.bf16.msra.mxu0 %v1084_v44 }
  0x63   :  { %694 = vmatpush.bf16.msra.mxu1 %v1148_v15 }
  0x66   :  { %682 = vmatpush.bf16.msra.mxu0 %v1076_v56 }
  0x67   :  { %695 = vmatpush.bf16.msra.mxu1 %v1140_v38 }
  0x6a   :  { %683 = vmatpush.bf16.msra.mxu0 %v1068_v62 }
  0x6b   :  { %696 = vmatpush.bf16.msra.mxu1 %v1132_v50 }
  0xaa   :  { %v177_v17 = vpop.f32.mrf.mxu0 }
  0xab   :  { %v178_v18 = vadd.f32 %v177_v17, %v164_v14  ;;  %v190_v19 = vpop.f32.mrf.mxu1 }
  0xac   :  { %v191_v20 = vadd.f32 %v190_v19, %v165_v16 }
  0xad   :  { %v194_v21 = vmax.f32 %v178_v18, 0.0 }
  0xae   :  { %v195_v22 = vmax.f32 %v191_v20, 0.0 }
  0xaf   :  { %v196_v23 = vpack.c.bf16 %v194_v21, %v194_v21 }
  0xb0   :  { %v197_v24 = vpack.c.bf16 %v195_v22, %v195_v22 }
  0xb1   :  { %404 = vmatmul.bf16.vlgmr.msra.gmra.mxu2 %v196_v23  ;;  %430 = vmatmul.bf16.vlgmr.msrb.gmra.mxu0 %v196_v23 }
  0xb2   :  { %417 = vmatmul.bf16.vlgmr.msra.gmra.mxu3 %v197_v24  ;;  %443 = vmatmul.bf16.vlgmr.msrb.gmra.mxu1 %v197_v24  ;;  %v179_v25 = vpop.f32.mrf.mxu0 }
  0xb3   :  { %v192_v26 = vpop.f32.mrf.mxu1  ;;  %848 = vmatpush.bf16.msra.mxu3 %v1348_v63  ;;  %835 = vmatpush.bf16.msra.mxu2 %v1340_v0  ;;  %v1344_v25 = vld [vmem:[%s1634_s7 + $0x58] sm:$0xff] }
  0xb4   :  { %v1337_v26 = vld [vmem:[%s1634_s7 + $0x20] sm:$0xff] }
  0xb7   :  { %849 = vmatpush.bf16.msra.mxu3 %v1347_v1  ;;  %836 = vmatpush.bf16.msra.mxu2 %v1339_v2 }
  0xbb   :  { %850 = vmatpush.bf16.msra.mxu3 %v1346_v3  ;;  %837 = vmatpush.bf16.msra.mxu2 %v1338_v4 }
  0xbf   :  { %851 = vmatpush.bf16.msra.mxu3 %v1345_v5  ;;  %838 = vmatpush.bf16.msra.mxu2 %v1337_v26 }
  0xc3   :  { %852 = vmatpush.bf16.msra.mxu3 %v1344_v25  ;;  %839 = vmatpush.bf16.msra.mxu2 %v1336_v28 }
  0xc7   :  { %853 = vmatpush.bf16.msra.mxu3 %v1343_v27  ;;  %840 = vmatpush.bf16.msra.mxu2 %v1335_v30 }
  0xcb   :  { %854 = vmatpush.bf16.msra.mxu3 %v1342_v29  ;;  %841 = vmatpush.bf16.msra.mxu2 %v1334_v32 }
  0xcf   :  { %855 = vmatpush.bf16.msra.mxu3 %v1341_v31  ;;  %842 = vmatpush.bf16.msra.mxu2 %v1333_v33 }
 0x12e   :  { %v431_v8 = vpop.f32.mrf.mxu0 }
 0x12f   :  { %v432_v9 = vadd.f32 %v431_v8, %v393_v7  ;;  %v444_v10 = vpop.f32.mrf.mxu1 }
 0x131   :  { %v445_v11 = vadd.f32 %v444_v10, %v432_v9 }
 0x133   :  { %v449_v13 = vmax.f32 %v445_v11, 0.0 }
 0x134   :  { %v405_v14 = vpop.f32.mrf.mxu2 }
 0x135   :  { %v451_v15 = vpack.c.bf16 %v449_v13, %v449_v13  ;;  %v406_v16 = vadd.f32 %v405_v14, %v392_v12  ;;  %v418_v17 = vpop.f32.mrf.mxu3 }
 0x136   :  { %v433_v18 = vpop.f32.mrf.mxu0 }
 0x137   :  { %v419_v19 = vadd.f32 %v418_v17, %v406_v16  ;;  %v446_v20 = vpop.f32.mrf.mxu1  ;;  %671 = vmatmul.bf16.vlgmr.msrb.gmra.mxu3 %v451_v15  ;;  %697 = vmatmul.bf16.vlgmr.msra.gmra.mxu1 %v451_v15 }
 0x139   :  { %v448_v21 = vmax.f32 %v419_v19, 0.0 }
 0x13b   :  { %v450_v22 = vpack.c.bf16 %v448_v21, %v448_v21 }
 0x13c   :  { %v407_v23 = vpop.f32.mrf.mxu2 }
 0x13d   :  { %v420_v24 = vpop.f32.mrf.mxu3  ;;  %658 = vmatmul.bf16.vlgmr.msrb.gmra.mxu2 %v450_v22  ;;  %684 = vmatmul.bf16.vlgmr.msra.gmra.mxu0 %v450_v22 }
 0x1b4   :  { %v698_v34 = vpop.f32.mrf.mxu1 }
 0x1ba   :  { %v672_v37 = vpop.f32.mrf.mxu3  ;;  %v685_v38 = vpop.f32.mrf.mxu0 }
 0x1bb   :  { %v686_v39 = vadd.f32 %v685_v38, %v647_v36 }
 0x1bc   :  { %v700_v40 = vpop.f32.mrf.mxu1 }
 0x1bd   :  { %v699_v41 = vadd.f32 %v698_v34, %v686_v39 }
 0x1bf   :  { %v703_v43 = vmax.f32 %v699_v41, 0.0 }
 0x1c0   :  { %v659_v44 = vpop.f32.mrf.mxu2 }
 0x1c1   :  { %v705_v45 = vpack.c.bf16 %v703_v43, %v703_v43  ;;  %v660_v46 = vadd.f32 %v659_v44, %v646_v42 }
 0x1c2   :  { %v674_v47 = vpop.f32.mrf.mxu3  ;;  %v687_v48 = vpop.f32.mrf.mxu0 }
 0x1c3   :  { %v673_v49 = vadd.f32 %v672_v37, %v660_v46  ;;  %856 = vmatmul.bf16.vlgmr.msra.gmra.mxu3 %v705_v45 }
 0x1c5   :  { %v702_v50 = vmax.f32 %v673_v49, 0.0 }
 0x1c7   :  { %v704_v51 = vpack.c.bf16 %v702_v50, %v702_v50 }
 0x1c8   :  { %v661_v52 = vpop.f32.mrf.mxu2 }
 0x1c9   :  { %843 = vmatmul.bf16.vlgmr.msra.gmra.mxu2 %v704_v51 }
 0x246   :  { %v857_v53 = vpop.f32.mrf.mxu3 }
 0x24c   :  { %v844_v55 = vpop.f32.mrf.mxu2 }
 0x24d   :  { %v845_v56 = vadd.f32 %v844_v55, %v738_v54 }
 0x24e   :  { %v859_v57 = vpop.f32.mrf.mxu3 }
 0x24f   :  { %v858_v58 = vadd.f32 %v857_v53, %v845_v56 }
 0x251   :  { %862 = vst.msk [vmem:[%s1636_s9] sm:$0x1] %vm861_vm0, %v858_v58 }
 0x254   :  { %v846_v59 = vpop.f32.mrf.mxu2 }
 0x255   :  { %867 = vsyncpa [#allocation3], 1 }
 0x256   :  { %868 = vsyncpa [#allocation5], 1 }

</bundles_post_ra>
